<compile_context>
chip_gen: v7x
topology: tpu7x:2x2x1
jax: 0.10.0
libtpu: 0.0.40
codegen_flags: <defaults>
</compile_context>

<pallas_src>
import functools

import jax
import jax.numpy as jnp
from jax import lax
from jax.experimental import pallas as pl
from jax.experimental.pallas import tpu as pltpu


def _round_up(x, m):
    return (x + m - 1) // m * m


def _cdiv(a, b):
    return -(-a // b)


def _vmem_limit_bytes(estimate):
    # Generous floor so small problems never trip the default scoped limits
    # (16 MiB on v5e / 32 MiB on v6e); capped at v7x's 64 MiB physical VMEM.
    return int(min(64 << 20, max(int(estimate) + (2 << 20), 32 << 20)))


def _weight_spec(block_shape, single_buffer):
    """BlockSpec for a grid-invariant parameter block (constant index map)."""
    index_map = lambda *_: (0,) * len(block_shape)
    if single_buffer and hasattr(pl, "Buffered"):
        # Constant block index => the second pipeline buffer is dead weight.
        return pl.BlockSpec(block_shape, index_map,
                            pipeline_mode=pl.Buffered(1))
    return pl.BlockSpec(block_shape, index_map)


# --------------------------------------------------------------------------
# Kernels
# --------------------------------------------------------------------------
def _fused_kernel(tok_ref, emb_ref, w1_ref, b1_ref, w2_ref, b2_ref, o_ref,
                  *, seq_len, inv_seq):
    # tok_ref: (TB, S) int32; emb_ref: (Vp, Ep); w1_ref: (Ep, Hp);
    # b1_ref: (1, Hp) f32; w2_ref: (Hp, Op); b2_ref: (1, Op) f32;
    # o_ref: (TB, Op) f32.  emb/w1/w2 may be f32 or bf16 (cdt).
    tb = tok_ref.shape[0]
    vp = emb_ref.shape[0]
    cdt = emb_ref.dtype

    tok = tok_ref[...]                                          # (TB, S) int32
    iota_v = lax.broadcasted_iota(jnp.int32, (1, vp), 1)        # slim (1, Vp)

    # Token-count histogram, accumulated in int32 (no per-step f32 cast).
    # Static loop is intentional: S is small here; large-S workloads use the
    # HBM gather path where the sequence is a grid axis.
    counts = jnp.zeros((tb, vp), dtype=jnp.int32)
    for s in range(seq_len):
        counts = counts + (tok[:, s:s + 1] == iota_v).astype(jnp.int32)

    # Gather+sum as an MXU matmul; 1/S applied to the (TB, Ep) result instead
    # of the (TB, Vp) counts.
    m = jnp.dot(counts.astype(cdt), emb_ref[...],
                preferred_element_type=jnp.float32) * inv_seq

    h = jnp.dot(m.astype(cdt), w1_ref[...],
                preferred_element_type=jnp.float32) + b1_ref[...]
    h = jnp.maximum(h, 0.0)

    out = jnp.dot(h.astype(cdt), w2_ref[...],
                  preferred_element_type=jnp.float32) + b2_ref[...]
    o_ref[...] = out.astype(o_ref.dtype)


def _gather_mean_kernel(tok_smem, emb_row_ref, mean_ref, *, inv_seq):
    # Grid = (B_pad, S).  emb_row_ref is the (1, Ep) row selected by the
    # data-dependent index_map (table itself never leaves HBM); mean_ref is
    # the resident (1, Ep) f32 output block for batch row b.
    del tok_smem  # only used by the index_maps
    s = pl.program_id(1)

    @pl.when(s == 0)
    def _init():
        mean_ref[...] = jnp.zeros_like(mean_ref)

    mean_ref[...] += emb_row_ref[...].astype(jnp.float32)

    @pl.when(s == pl.num_programs(1) - 1)
    def _finalize():
        mean_ref[...] = mean_ref[...] * inv_seq


def _mlp_kernel(m_ref, w1_ref, b1_ref, w2_ref, b2_ref, o_ref):
    cdt = w1_ref.dtype
    h = jnp.dot(m_ref[...].astype(cdt), w1_ref[...],
                preferred_element_type=jnp.float32) + b1_ref[...]
    h = jnp.maximum(h, 0.0)
    out = jnp.dot(h.astype(cdt), w2_ref[...],
                  preferred_element_type=jnp.float32) + b2_ref[...]
    o_ref[...] = out.astype(o_ref.dtype)


# --------------------------------------------------------------------------
# Parameter prep + forward wrapper
# --------------------------------------------------------------------------
def prepare_params(emb_weight, w1, b1, w2, b2, *,
                   param_dtype=jnp.float32, lane_multiple=128):
    """One-time prep: transpose + zero-pad lane dims, optional bf16 cast.

    lane_multiple=128 matches every generation's lane width / the v5e MXU;
    pass 256 on v6e/v7x when E/H >= 256 to fill the 256-wide MXU.
    param_dtype=jnp.bfloat16 gives ~2-4x MXU throughput and half the memory
    traffic on v6e/v7x (accumulation stays f32); biases stay f32.
    """
    V, E = emb_weight.shape
    H = w1.shape[0]
    O = w2.shape[0]
    # +1 guarantees a spare all-zero row usable as the padding id (= V).
    Vp = _round_up(V + 1, lane_multiple)
    Ep = _round_up(E, lane_multiple)
    Hp = _round_up(H, lane_multiple)
    Op = _round_up(O, lane_multiple)

    emb_p = jnp.zeros((Vp, Ep), param_dtype).at[:V, :E].set(
        emb_weight.astype(param_dtype))
    w1_p = jnp.zeros((Ep, Hp), param_dtype).at[:E, :H].set(
        w1.T.astype(param_dtype))
    w2_p = jnp.zeros((Hp, Op), param_dtype).at[:H, :O].set(
        w2.T.astype(param_dtype))
    b1_p = jnp.zeros((1, Hp), jnp.float32).at[0, :H].set(b1.astype(jnp.float32))
    b2_p = jnp.zeros((1, Op), jnp.float32).at[0, :O].set(b2.astype(jnp.float32))
    return {"emb": emb_p, "w1": w1_p, "b1": b1_p, "w2": w2_p, "b2": b2_p,
            "out_dim": O, "pad_id": V}


def fasttext_forward(token_ids, params, *, use_gather=None,
                     single_buffer_weights=True):
    """token_ids: (B, S) int32 in [0, vocab). Returns (B, O) float32."""
    B, S = token_ids.shape
    emb, w1, b1, w2, b2 = (params[k] for k in ("emb", "w1", "b1", "w2", "b2"))
    Vp, Ep = emb.shape
    Hp = w1.shape[1]
    Op = w2.shape[1]
    pad_id = params["pad_id"]
    itemsize = emb.dtype.itemsize

    # Batch tile: multiple of 8 sublanes, capped at 128 rows (counts stay in
    # registers), aiming for >=4 grid steps when B allows so a v7x megacore
    # has work for both TensorCores on the "parallel" axis.
    B8 = _round_up(max(B, 1), 8)
    TB = max(8, min(128, _round_up(_cdiv(B8, 4), 8)))
    B_pad = _round_up(B8, TB)
    # Padded batch rows get the all-zero padding id; they are sliced off below.
    tok_p = jnp.full((B_pad, S), pad_id, jnp.int32).at[:B, :].set(
        token_ids.astype(jnp.int32))

    if use_gather is None:
        # Keep the full table in VMEM only while it is comfortably small;
        # otherwise gather rows from HBM (v7x has only 64 MiB VMEM per TC).
        use_gather = int(emb.size) * itemsize > (8 << 20)

    mlp_param_bytes = sum(int(a.size) * a.dtype.itemsize
                          for a in (w1, b1, w2, b2))
    weight_bufs = 1 if single_buffer_weights else 2

    if not use_gather:
        # --- fused path: one-hot counts @ emb + MLP in a single kernel ------
        param_bytes = int(emb.size) * itemsize + mlp_param_bytes
        est = (param_bytes * weight_bufs
               + 2 * (TB * S * 4 + TB * Op * 4)     # double-buffered tok/out
               + TB * Vp * 8                        # counts + compare temps
               + TB * (Ep + Hp + Op) * 4)           # m / h / out temps
        cost = pl.CostEstimate(
            flops=int(2 * B_pad * (Vp * Ep + Ep * Hp + Hp * Op)),
            transcendentals=0,
            bytes_accessed=int(tok_p.size * 4 + param_bytes + B_pad * Op * 4))

        out = pl.pallas_call(
            functools.partial(_fused_kernel, seq_len=S, inv_seq=1.0 / S),
            out_shape=jax.ShapeDtypeStruct((B_pad, Op), jnp.float32),
            grid_spec=pltpu.PrefetchScalarGridSpec(
                num_scalar_prefetch=0,
                grid=(B_pad // TB,),
                in_specs=[
                    pl.BlockSpec((TB, S), lambda i: (i, 0)),         # token ids
                    _weight_spec((Vp, Ep), single_buffer_weights),   # emb
                    _weight_spec((Ep, Hp), single_buffer_weights),   # W1^T
                    _weight_spec((1, Hp), single_buffer_weights),    # b1
                    _weight_spec((Hp, Op), single_buffer_weights),   # W2^T
                    _weight_spec((1, Op), single_buffer_weights),    # b2
                ],
                out_specs=pl.BlockSpec((TB, Op), lambda i: (i, 0)),
            ),
            compiler_params=pltpu.CompilerParams(
                dimension_semantics=("parallel",),
                vmem_limit_bytes=_vmem_limit_bytes(est)),
            cost_estimate=cost,
        )(tok_p, emb, w1, b1, w2, b2)
        return out[:B, :params["out_dim"]]

    # --- gather path: table stays in HBM, rows DMA'd via scalar prefetch ----
    tok_flat = tok_p.reshape(-1)        # 1-D SMEM prefetch (avoids 2-D padding)
    mean_cost = pl.CostEstimate(
        flops=int(B_pad * S * Ep), transcendentals=0,
        bytes_accessed=int(B_pad * S * (Ep * itemsize + 4) + B_pad * Ep * 4))
    mean = pl.pallas_call(
        functools.partial(_gather_mean_kernel, inv_seq=1.0 / S),
        out_shape=jax.ShapeDtypeStruct((B_pad, Ep), jnp.float32),
        grid_spec=pltpu.PrefetchScalarGridSpec(
            num_scalar_prefetch=1,
            grid=(B_pad, S),
            in_specs=[
                # Data-dependent row gather: only the referenced (1, Ep) rows
                # are DMA'd; the (Vp, Ep) table never resides in VMEM.
                pl.BlockSpec((1, Ep), lambda b, s, tok: (tok[b * S + s], 0)),
            ],
            out_specs=pl.BlockSpec((1, Ep), lambda b, s, tok: (b, 0)),
        ),
        compiler_params=pltpu.CompilerParams(
            dimension_semantics=("parallel", "arbitrary"),
            vmem_limit_bytes=_vmem_limit_bytes(4 * Ep * itemsize + 2 * Ep * 4)),
        cost_estimate=mean_cost,
    )(tok_flat, emb)

    mlp_est = (mlp_param_bytes * weight_bufs
               + 2 * (TB * Ep * 4 + TB * Op * 4)
               + TB * (Hp + Op) * 4)
    mlp_cost = pl.CostEstimate(
        flops=int(2 * B_pad * (Ep * Hp + Hp * Op)), transcendentals=0,
        bytes_accessed=int(B_pad * Ep * 4 + mlp_param_bytes + B_pad * Op * 4))
    out = pl.pallas_call(
        _mlp_kernel,
        out_shape=jax.ShapeDtypeStruct((B_pad, Op), jnp.float32),
        grid_spec=pltpu.PrefetchScalarGridSpec(
            num_scalar_prefetch=0,
            grid=(B_pad // TB,),
            in_specs=[
                pl.BlockSpec((TB, Ep), lambda i: (i, 0)),            # mean
                _weight_spec((Ep, Hp), single_buffer_weights),       # W1^T
                _weight_spec((1, Hp), single_buffer_weights),        # b1
                _weight_spec((Hp, Op), single_buffer_weights),       # W2^T
                _weight_spec((1, Op), single_buffer_weights),        # b2
            ],
            out_specs=pl.BlockSpec((TB, Op), lambda i: (i, 0)),
        ),
        compiler_params=pltpu.CompilerParams(
            dimension_semantics=("parallel",),
            vmem_limit_bytes=_vmem_limit_bytes(mlp_est)),
        cost_estimate=mlp_cost,
    )(mean, w1, b1, w2, b2)
    return out[:B, :params["out_dim"]]


def _forward_checked(token_ids, params, **kwargs):
    try:
        return fasttext_forward(token_ids, params, **kwargs)
    except Exception:
        # Fallback for Pallas builds that reject pl.Buffered(1) single
        # buffering of the grid-invariant weight blocks.
        return fasttext_forward(token_ids, params,
                                single_buffer_weights=False, **kwargs)


def reference_forward(token_ids, emb_weight, w1, b1, w2, b2):
    x_emb = jnp.take(emb_weight, token_ids, axis=0)
    m = jnp.mean(x_emb, axis=1)
    h = jnp.maximum(m @ w1.T + b1, 0.0)
    return h @ w2.T + b2


if __name__ == "__main__":
    # Small, deterministic shapes consistent with the module's forward.
    vocab_size = 50
    embedding_dim = 32
    hidden_size = 64
    output_size = 16
    batch = 4
    seq_len = 8

    key = jax.random.PRNGKey(0)
    k_emb, k_w1, k_b1, k_w2, k_b2, k_ids = jax.random.split(key, 6)

    emb_weight = jax.random.normal(k_emb, (vocab_size, embedding_dim),
                                   dtype=jnp.float32)
    w1 = jax.random.normal(k_w1, (hidden_size, embedding_dim),
                           dtype=jnp.float32) * 0.1
    b1 = jax.random.normal(k_b1, (hidden_size,), dtype=jnp.float32) * 0.1
    w2 = jax.random.normal(k_w2, (output_size, hidden_size),
                           dtype=jnp.float32) * 0.1
    b2 = jax.random.normal(k_b2, (output_size,), dtype=jnp.float32) * 0.1

    token_ids = jax.random.randint(k_ids, (batch, seq_len), 0, vocab_size,
                                   dtype=jnp.int32)

    ref = reference_forward(token_ids, emb_weight, w1, b1, w2, b2)

    # 1) f32 params, fused (table-in-VMEM) path — strict tolerance.
    params_f32 = prepare_params(emb_weight, w1, b1, w2, b2,
                                param_dtype=jnp.float32)
    out_f32 = jax.block_until_ready(
        _forward_checked(token_ids, params_f32, use_gather=False))
    assert out_f32.shape == (batch, output_size)
    assert jnp.allclose(out_f32, ref, atol=1e-5, rtol=1e-5), "f32 fused mismatch"

    # 2) f32 params, HBM row-gather path (the realistic-vocab path) — strict.
    out_gather = jax.block_until_ready(
        _forward_checked(token_ids, params_f32, use_gather=True))
    assert out_gather.shape == (batch, output_size)
    assert jnp.allclose(out_gather, ref, atol=1e-5, rtol=1e-5), "gather mismatch"

    # 3) bf16 params (v6e/v7x MXU-native), f32 accumulation — bf16 tolerance.
    params_bf16 = prepare_params(emb_weight, w1, b1, w2, b2,
                                 param_dtype=jnp.bfloat16)
    out_bf16 = jax.block_until_ready(
        _forward_checked(token_ids, params_bf16, use_gather=False))
    assert out_bf16.shape == (batch, output_size)
    assert jnp.allclose(out_bf16, ref, atol=5e-2, rtol=5e-2), "bf16 mismatch"

    print("KERNEL_OK")
</pallas_src>

<mosaic_0001>
module attributes {stable_mosaic.version = 11 : i64} {
  func.func @_fused_kernel(%arg0: i32, %arg1: memref<8x8xi32, #tpu.memory_space<vmem>>, %arg2: memref<128x128xf32, #tpu.memory_space<vmem>>, %arg3: memref<128x128xf32, #tpu.memory_space<vmem>>, %arg4: memref<1x128xf32, #tpu.memory_space<vmem>>, %arg5: memref<128x128xf32, #tpu.memory_space<vmem>>, %arg6: memref<1x128xf32, #tpu.memory_space<vmem>>, %arg7: memref<8x128xf32, #tpu.memory_space<vmem>>) attributes {dimension_semantics = [#tpu.dimension_semantics<parallel>], iteration_bounds = array<i64: 1>, scalar_prefetch = 0 : i64, scratch_operands = 0 : i64, tpu.core_type = #tpu.core_type<tc>, window_params = [{transform_indices = @transform_0, window_bounds = array<i64: 8, 8>}, {pipeline_mode = #tpu.pipeline_mode<synchronous>, transform_indices = @transform_1, window_bounds = array<i64: 128, 128>}, {pipeline_mode = #tpu.pipeline_mode<synchronous>, transform_indices = @transform_2, window_bounds = array<i64: 128, 128>}, {pipeline_mode = #tpu.pipeline_mode<synchronous>, transform_indices = @transform_3, window_bounds = array<i64: 1, 128>}, {pipeline_mode = #tpu.pipeline_mode<synchronous>, transform_indices = @transform_4, window_bounds = array<i64: 128, 128>}, {pipeline_mode = #tpu.pipeline_mode<synchronous>, transform_indices = @transform_5, window_bounds = array<i64: 1, 128>}, {transform_indices = @transform_6, window_bounds = array<i64: 8, 128>}]} {
    %c0 = arith.constant 0 : index
    %c0_0 = arith.constant 0 : index
    %0 = vector.load %arg1[%c0, %c0_0] : memref<8x8xi32, #tpu.memory_space<vmem>>, vector<8x8xi32>
    %1 = tpu.iota {dimensions = array<i32: 1>} : vector<1x128xi32>
    %c0_i32 = arith.constant 0 : i32
    %2 = vector.broadcast %c0_i32 : i32 to vector<8x128xi32>
    %3 = vector.extract_strided_slice %0 {offsets = [0, 0], sizes = [8, 1], strides = [1, 1]} : vector<8x8xi32> to vector<8x1xi32>
    %4 = vector.broadcast %3 : vector<8x1xi32> to vector<8x128xi32>
    %5 = vector.broadcast %1 : vector<1x128xi32> to vector<8x128xi32>
    %6 = arith.cmpi eq, %4, %5 : vector<8x128xi32>
    %7 = arith.extui %6 : vector<8x128xi1> to vector<8x128xi32>
    %8 = arith.addi %2, %7 : vector<8x128xi32>
    %9 = vector.extract_strided_slice %0 {offsets = [0, 1], sizes = [8, 1], strides = [1, 1]} : vector<8x8xi32> to vector<8x1xi32>
    %10 = vector.broadcast %9 : vector<8x1xi32> to vector<8x128xi32>
    %11 = vector.broadcast %1 : vector<1x128xi32> to vector<8x128xi32>
    %12 = arith.cmpi eq, %10, %11 : vector<8x128xi32>
    %13 = arith.extui %12 : vector<8x128xi1> to vector<8x128xi32>
    %14 = arith.addi %8, %13 : vector<8x128xi32>
    %15 = vector.extract_strided_slice %0 {offsets = [0, 2], sizes = [8, 1], strides = [1, 1]} : vector<8x8xi32> to vector<8x1xi32>
    %16 = vector.broadcast %15 : vector<8x1xi32> to vector<8x128xi32>
    %17 = vector.broadcast %1 : vector<1x128xi32> to vector<8x128xi32>
    %18 = arith.cmpi eq, %16, %17 : vector<8x128xi32>
    %19 = arith.extui %18 : vector<8x128xi1> to vector<8x128xi32>
    %20 = arith.addi %14, %19 : vector<8x128xi32>
    %21 = vector.extract_strided_slice %0 {offsets = [0, 3], sizes = [8, 1], strides = [1, 1]} : vector<8x8xi32> to vector<8x1xi32>
    %22 = vector.broadcast %21 : vector<8x1xi32> to vector<8x128xi32>
    %23 = vector.broadcast %1 : vector<1x128xi32> to vector<8x128xi32>
    %24 = arith.cmpi eq, %22, %23 : vector<8x128xi32>
    %25 = arith.extui %24 : vector<8x128xi1> to vector<8x128xi32>
    %26 = arith.addi %20, %25 : vector<8x128xi32>
    %27 = vector.extract_strided_slice %0 {offsets = [0, 4], sizes = [8, 1], strides = [1, 1]} : vector<8x8xi32> to vector<8x1xi32>
    %28 = vector.broadcast %27 : vector<8x1xi32> to vector<8x128xi32>
    %29 = vector.broadcast %1 : vector<1x128xi32> to vector<8x128xi32>
    %30 = arith.cmpi eq, %28, %29 : vector<8x128xi32>
    %31 = arith.extui %30 : vector<8x128xi1> to vector<8x128xi32>
    %32 = arith.addi %26, %31 : vector<8x128xi32>
    %33 = vector.extract_strided_slice %0 {offsets = [0, 5], sizes = [8, 1], strides = [1, 1]} : vector<8x8xi32> to vector<8x1xi32>
    %34 = vector.broadcast %33 : vector<8x1xi32> to vector<8x128xi32>
    %35 = vector.broadcast %1 : vector<1x128xi32> to vector<8x128xi32>
    %36 = arith.cmpi eq, %34, %35 : vector<8x128xi32>
    %37 = arith.extui %36 : vector<8x128xi1> to vector<8x128xi32>
    %38 = arith.addi %32, %37 : vector<8x128xi32>
    %39 = vector.extract_strided_slice %0 {offsets = [0, 6], sizes = [8, 1], strides = [1, 1]} : vector<8x8xi32> to vector<8x1xi32>
    %40 = vector.broadcast %39 : vector<8x1xi32> to vector<8x128xi32>
    %41 = vector.broadcast %1 : vector<1x128xi32> to vector<8x128xi32>
    %42 = arith.cmpi eq, %40, %41 : vector<8x128xi32>
    %43 = arith.extui %42 : vector<8x128xi1> to vector<8x128xi32>
    %44 = arith.addi %38, %43 : vector<8x128xi32>
    %45 = vector.extract_strided_slice %0 {offsets = [0, 7], sizes = [8, 1], strides = [1, 1]} : vector<8x8xi32> to vector<8x1xi32>
    %46 = vector.broadcast %45 : vector<8x1xi32> to vector<8x128xi32>
    %47 = vector.broadcast %1 : vector<1x128xi32> to vector<8x128xi32>
    %48 = arith.cmpi eq, %46, %47 : vector<8x128xi32>
    %49 = arith.extui %48 : vector<8x128xi1> to vector<8x128xi32>
    %50 = arith.addi %44, %49 : vector<8x128xi32>
    %51 = arith.sitofp %50 : vector<8x128xi32> to vector<8x128xf32>
    %c0_1 = arith.constant 0 : index
    %c0_2 = arith.constant 0 : index
    %52 = vector.load %arg2[%c0_1, %c0_2] : memref<128x128xf32, #tpu.memory_space<vmem>>, vector<128x128xf32>
    %cst = arith.constant dense<0.000000e+00> : vector<8x128xf32>
    %53 = tpu.matmul %51, %52, %cst {dimension_numbers = #tpu.dot_dimension_numbers<[1], [0], [0], [1], [0, 0, 1, 1], [], []>} : vector<8x128xf32>, vector<128x128xf32>, vector<8x128xf32> -> vector<8x128xf32>
    %cst_3 = arith.constant 1.250000e-01 : f32
    %54 = vector.broadcast %cst_3 : f32 to vector<8x128xf32>
    %55 = arith.mulf %53, %54 : vector<8x128xf32>
    %c0_4 = arith.constant 0 : index
    %c0_5 = arith.constant 0 : index
    %56 = vector.load %arg3[%c0_4, %c0_5] : memref<128x128xf32, #tpu.memory_space<vmem>>, vector<128x128xf32>
    %cst_6 = arith.constant dense<0.000000e+00> : vector<8x128xf32>
    %57 = tpu.matmul %55, %56, %cst_6 {dimension_numbers = #tpu.dot_dimension_numbers<[1], [0], [0], [1], [0, 0, 1, 1], [], []>} : vector<8x128xf32>, vector<128x128xf32>, vector<8x128xf32> -> vector<8x128xf32>
    %c0_7 = arith.constant 0 : index
    %c0_8 = arith.constant 0 : index
    %58 = vector.load %arg4[%c0_7, %c0_8] : memref<1x128xf32, #tpu.memory_space<vmem>>, vector<1x128xf32>
    %59 = vector.broadcast %58 : vector<1x128xf32> to vector<8x128xf32>
    %60 = arith.addf %57, %59 : vector<8x128xf32>
    %cst_9 = arith.constant 0.000000e+00 : f32
    %61 = vector.broadcast %cst_9 : f32 to vector<8x128xf32>
    %62 = arith.maximumf %60, %61 : vector<8x128xf32>
    %c0_10 = arith.constant 0 : index
    %c0_11 = arith.constant 0 : index
    %63 = vector.load %arg5[%c0_10, %c0_11] : memref<128x128xf32, #tpu.memory_space<vmem>>, vector<128x128xf32>
    %cst_12 = arith.constant dense<0.000000e+00> : vector<8x128xf32>
    %64 = tpu.matmul %62, %63, %cst_12 {dimension_numbers = #tpu.dot_dimension_numbers<[1], [0], [0], [1], [0, 0, 1, 1], [], []>} : vector<8x128xf32>, vector<128x128xf32>, vector<8x128xf32> -> vector<8x128xf32>
    %c0_13 = arith.constant 0 : index
    %c0_14 = arith.constant 0 : index
    %65 = vector.load %arg6[%c0_13, %c0_14] : memref<1x128xf32, #tpu.memory_space<vmem>>, vector<1x128xf32>
    %66 = vector.broadcast %65 : vector<1x128xf32> to vector<8x128xf32>
    %67 = arith.addf %64, %66 : vector<8x128xf32>
    %c0_15 = arith.constant 0 : index
    %c0_16 = arith.constant 0 : index
    %68 = vector.load %arg7[%c0_15, %c0_16] : memref<8x128xf32, #tpu.memory_space<vmem>>, vector<8x128xf32>
    tpu.vector_store %arg7[%c0_15, %c0_16], %67 {strides = array<i32>} : memref<8x128xf32, #tpu.memory_space<vmem>>, vector<8x128xf32>,
    return
  }
  func.func @transform_0(%arg0: i32) -> (i32, i32) {
    %c0_i32 = arith.constant 0 : i32
    %c0_i32_0 = arith.constant 0 : i32
    return %arg0, %c0_i32 : i32, i32
  }
  func.func @transform_1(%arg0: i32) -> (i32, i32) {
    %c0_i32 = arith.constant 0 : i32
    %c0_i32_0 = arith.constant 0 : i32
    %c0_i32_1 = arith.constant 0 : i32
    return %c0_i32, %c0_i32_0 : i32, i32
  }
  func.func @transform_2(%arg0: i32) -> (i32, i32) {
    %c0_i32 = arith.constant 0 : i32
    %c0_i32_0 = arith.constant 0 : i32
    %c0_i32_1 = arith.constant 0 : i32
    return %c0_i32, %c0_i32_0 : i32, i32
  }
  func.func @transform_3(%arg0: i32) -> (i32, i32) {
    %c0_i32 = arith.constant 0 : i32
    %c0_i32_0 = arith.constant 0 : i32
    %c0_i32_1 = arith.constant 0 : i32
    return %c0_i32, %c0_i32_0 : i32, i32
  }
  func.func @transform_4(%arg0: i32) -> (i32, i32) {
    %c0_i32 = arith.constant 0 : i32
    %c0_i32_0 = arith.constant 0 : i32
    %c0_i32_1 = arith.constant 0 : i32
    return %c0_i32, %c0_i32_0 : i32, i32
  }
  func.func @transform_5(%arg0: i32) -> (i32, i32) {
    %c0_i32 = arith.constant 0 : i32
    %c0_i32_0 = arith.constant 0 : i32
    %c0_i32_1 = arith.constant 0 : i32
    return %c0_i32, %c0_i32_0 : i32, i32
  }
  func.func @transform_6(%arg0: i32) -> (i32, i32) {
    %c0_i32 = arith.constant 0 : i32
    %c0_i32_0 = arith.constant 0 : i32
    return %arg0, %c0_i32 : i32, i32
  }
}

module attributes {stable_mosaic.version = 11 : i64} {
  func.func @_fused_kernel(%arg0: i32, %arg1: memref<8x8xi32, #tpu.memory_space<vmem>>, %arg2: memref<128x128xf32, #tpu.memory_space<vmem>>, %arg3: memref<128x128xf32, #tpu.memory_space<vmem>>, %arg4: memref<1x128xf32, #tpu.memory_space<vmem>>, %arg5: memref<128x128xf32, #tpu.memory_space<vmem>>, %arg6: memref<1x128xf32, #tpu.memory_space<vmem>>, %arg7: memref<8x128xf32, #tpu.memory_space<vmem>>) attributes {dimension_semantics = [#tpu.dimension_semantics<parallel>], iteration_bounds = array<i64: 1>, scalar_prefetch = 0 : i64, scratch_operands = 0 : i64, tpu.core_type = #tpu.core_type<tc>, window_params = [{transform_indices = @transform_0, window_bounds = array<i64: 8, 8>}, {pipeline_mode = #tpu.pipeline_mode<synchronous>, transform_indices = @transform_1, window_bounds = array<i64: 128, 128>}, {pipeline_mode = #tpu.pipeline_mode<synchronous>, transform_indices = @transform_2, window_bounds = array<i64: 128, 128>}, {pipeline_mode = #tpu.pipeline_mode<synchronous>, transform_indices = @transform_3, window_bounds = array<i64: 1, 128>}, {pipeline_mode = #tpu.pipeline_mode<synchronous>, transform_indices = @transform_4, window_bounds = array<i64: 128, 128>}, {pipeline_mode = #tpu.pipeline_mode<synchronous>, transform_indices = @transform_5, window_bounds = array<i64: 1, 128>}, {transform_indices = @transform_6, window_bounds = array<i64: 8, 128>}]} {
    %c0 = arith.constant 0 : index
    %c0_0 = arith.constant 0 : index
    %0 = vector.load %arg1[%c0, %c0_0] : memref<8x8xi32, #tpu.memory_space<vmem>>, vector<8x8xi32>
    %1 = tpu.iota {dimensions = array<i32: 1>} : vector<1x128xi32>
    %c0_i32 = arith.constant 0 : i32
    %2 = vector.broadcast %c0_i32 : i32 to vector<8x128xi32>
    %3 = vector.extract_strided_slice %0 {offsets = [0, 0], sizes = [8, 1], strides = [1, 1]} : vector<8x8xi32> to vector<8x1xi32>
    %4 = vector.broadcast %3 : vector<8x1xi32> to vector<8x128xi32>
    %5 = vector.broadcast %1 : vector<1x128xi32> to vector<8x128xi32>
    %6 = arith.cmpi eq, %4, %5 : vector<8x128xi32>
    %7 = arith.extui %6 : vector<8x128xi1> to vector<8x128xi32>
    %8 = arith.addi %2, %7 : vector<8x128xi32>
    %9 = vector.extract_strided_slice %0 {offsets = [0, 1], sizes = [8, 1], strides = [1, 1]} : vector<8x8xi32> to vector<8x1xi32>
    %10 = vector.broadcast %9 : vector<8x1xi32> to vector<8x128xi32>
    %11 = vector.broadcast %1 : vector<1x128xi32> to vector<8x128xi32>
    %12 = arith.cmpi eq, %10, %11 : vector<8x128xi32>
    %13 = arith.extui %12 : vector<8x128xi1> to vector<8x128xi32>
    %14 = arith.addi %8, %13 : vector<8x128xi32>
    %15 = vector.extract_strided_slice %0 {offsets = [0, 2], sizes = [8, 1], strides = [1, 1]} : vector<8x8xi32> to vector<8x1xi32>
    %16 = vector.broadcast %15 : vector<8x1xi32> to vector<8x128xi32>
    %17 = vector.broadcast %1 : vector<1x128xi32> to vector<8x128xi32>
    %18 = arith.cmpi eq, %16, %17 : vector<8x128xi32>
    %19 = arith.extui %18 : vector<8x128xi1> to vector<8x128xi32>
    %20 = arith.addi %14, %19 : vector<8x128xi32>
    %21 = vector.extract_strided_slice %0 {offsets = [0, 3], sizes = [8, 1], strides = [1, 1]} : vector<8x8xi32> to vector<8x1xi32>
    %22 = vector.broadcast %21 : vector<8x1xi32> to vector<8x128xi32>
    %23 = vector.broadcast %1 : vector<1x128xi32> to vector<8x128xi32>
    %24 = arith.cmpi eq, %22, %23 : vector<8x128xi32>
    %25 = arith.extui %24 : vector<8x128xi1> to vector<8x128xi32>
    %26 = arith.addi %20, %25 : vector<8x128xi32>
    %27 = vector.extract_strided_slice %0 {offsets = [0, 4], sizes = [8, 1], strides = [1, 1]} : vector<8x8xi32> to vector<8x1xi32>
    %28 = vector.broadcast %27 : vector<8x1xi32> to vector<8x128xi32>
    %29 = vector.broadcast %1 : vector<1x128xi32> to vector<8x128xi32>
    %30 = arith.cmpi eq, %28, %29 : vector<8x128xi32>
    %31 = arith.extui %30 : vector<8x128xi1> to vector<8x128xi32>
    %32 = arith.addi %26, %31 : vector<8x128xi32>
    %33 = vector.extract_strided_slice %0 {offsets = [0, 5], sizes = [8, 1], strides = [1, 1]} : vector<8x8xi32> to vector<8x1xi32>
    %34 = vector.broadcast %33 : vector<8x1xi32> to vector<8x128xi32>
    %35 = vector.broadcast %1 : vector<1x128xi32> to vector<8x128xi32>
    %36 = arith.cmpi eq, %34, %35 : vector<8x128xi32>
    %37 = arith.extui %36 : vector<8x128xi1> to vector<8x128xi32>
    %38 = arith.addi %32, %37 : vector<8x128xi32>
    %39 = vector.extract_strided_slice %0 {offsets = [0, 6], sizes = [8, 1], strides = [1, 1]} : vector<8x8xi32> to vector<8x1xi32>
    %40 = vector.broadcast %39 : vector<8x1xi32> to vector<8x128xi32>
    %41 = vector.broadcast %1 : vector<1x128xi32> to vector<8x128xi32>
    %42 = arith.cmpi eq, %40, %41 : vector<8x128xi32>
    %43 = arith.extui %42 : vector<8x128xi1> to vector<8x128xi32>
    %44 = arith.addi %38, %43 : vector<8x128xi32>
    %45 = vector.extract_strided_slice %0 {offsets = [0, 7], sizes = [8, 1], strides = [1, 1]} : vector<8x8xi32> to vector<8x1xi32>
    %46 = vector.broadcast %45 : vector<8x1xi32> to vector<8x128xi32>
    %47 = vector.broadcast %1 : vector<1x128xi32> to vector<8x128xi32>
    %48 = arith.cmpi eq, %46, %47 : vector<8x128xi32>
    %49 = arith.extui %48 : vector<8x128xi1> to vector<8x128xi32>
    %50 = arith.addi %44, %49 : vector<8x128xi32>
    %51 = arith.sitofp %50 : vector<8x128xi32> to vector<8x128xf32>
    %c0_1 = arith.constant 0 : index
    %c0_2 = arith.constant 0 : index
    %52 = vector.load %arg2[%c0_1, %c0_2] : memref<128x128xf32, #tpu.memory_space<vmem>>, vector<128x128xf32>
    %cst = arith.constant dense<0.000000e+00> : vector<8x128xf32>
    %53 = tpu.matmul %51, %52, %cst {dimension_numbers = #tpu.dot_dimension_numbers<[1], [0], [0], [1], [0, 0, 1, 1], [], []>} : vector<8x128xf32>, vector<128x128xf32>, vector<8x128xf32> -> vector<8x128xf32>
    %cst_3 = arith.constant 1.250000e-01 : f32
    %54 = vector.broadcast %cst_3 : f32 to vector<8x128xf32>
    %55 = arith.mulf %53, %54 : vector<8x128xf32>
    %c0_4 = arith.constant 0 : index
    %c0_5 = arith.constant 0 : index
    %56 = vector.load %arg3[%c0_4, %c0_5] : memref<128x128xf32, #tpu.memory_space<vmem>>, vector<128x128xf32>
    %cst_6 = arith.constant dense<0.000000e+00> : vector<8x128xf32>
    %57 = tpu.matmul %55, %56, %cst_6 {dimension_numbers = #tpu.dot_dimension_numbers<[1], [0], [0], [1], [0, 0, 1, 1], [], []>} : vector<8x128xf32>, vector<128x128xf32>, vector<8x128xf32> -> vector<8x128xf32>
    %c0_7 = arith.constant 0 : index
    %c0_8 = arith.constant 0 : index
    %58 = vector.load %arg4[%c0_7, %c0_8] : memref<1x128xf32, #tpu.memory_space<vmem>>, vector<1x128xf32>
    %59 = vector.broadcast %58 : vector<1x128xf32> to vector<8x128xf32>
    %60 = arith.addf %57, %59 : vector<8x128xf32>
    %cst_9 = arith.constant 0.000000e+00 : f32
    %61 = vector.broadcast %cst_9 : f32 to vector<8x128xf32>
    %62 = arith.maximumf %60, %61 : vector<8x128xf32>
    %c0_10 = arith.constant 0 : index
    %c0_11 = arith.constant 0 : index
    %63 = vector.load %arg5[%c0_10, %c0_11] : memref<128x128xf32, #tpu.memory_space<vmem>>, vector<128x128xf32>
    %cst_12 = arith.constant dense<0.000000e+00> : vector<8x128xf32>
    %64 = tpu.matmul %62, %63, %cst_12 {dimension_numbers = #tpu.dot_dimension_numbers<[1], [0], [0], [1], [0, 0, 1, 1], [], []>} : vector<8x128xf32>, vector<128x128xf32>, vector<8x128xf32> -> vector<8x128xf32>
    %c0_13 = arith.constant 0 : index
    %c0_14 = arith.constant 0 : index
    %65 = vector.load %arg6[%c0_13, %c0_14] : memref<1x128xf32, #tpu.memory_space<vmem>>, vector<1x128xf32>
    %66 = vector.broadcast %65 : vector<1x128xf32> to vector<8x128xf32>
    %67 = arith.addf %64, %66 : vector<8x128xf32>
    %c0_15 = arith.constant 0 : index
    %c0_16 = arith.constant 0 : index
    %68 = vector.load %arg7[%c0_15, %c0_16] : memref<8x128xf32, #tpu.memory_space<vmem>>, vector<8x128xf32>
    tpu.vector_store %arg7[%c0_15, %c0_16], %67 {strides = array<i32>} : memref<8x128xf32, #tpu.memory_space<vmem>>, vector<8x128xf32>,
    return
  }
  func.func @transform_0(%arg0: i32) -> (i32, i32) {
    %c0_i32 = arith.constant 0 : i32
    %c0_i32_0 = arith.constant 0 : i32
    return %arg0, %c0_i32 : i32, i32
  }
  func.func @transform_1(%arg0: i32) -> (i32, i32) {
    %c0_i32 = arith.constant 0 : i32
    %c0_i32_0 = arith.constant 0 : i32
    %c0_i32_1 = arith.constant 0 : i32
    return %c0_i32, %c0_i32_0 : i32, i32
  }
  func.func @transform_2(%arg0: i32) -> (i32, i32) {
    %c0_i32 = arith.constant 0 : i32
    %c0_i32_0 = arith.constant 0 : i32
    %c0_i32_1 = arith.constant 0 : i32
    return %c0_i32, %c0_i32_0 : i32, i32
  }
  func.func @transform_3(%arg0: i32) -> (i32, i32) {
    %c0_i32 = arith.constant 0 : i32
    %c0_i32_0 = arith.constant 0 : i32
    %c0_i32_1 = arith.constant 0 : i32
    return %c0_i32, %c0_i32_0 : i32, i32
  }
  func.func @transform_4(%arg0: i32) -> (i32, i32) {
    %c0_i32 = arith.constant 0 : i32
    %c0_i32_0 = arith.constant 0 : i32
    %c0_i32_1 = arith.constant 0 : i32
    return %c0_i32, %c0_i32_0 : i32, i32
  }
  func.func @transform_5(%arg0: i32) -> (i32, i32) {
    %c0_i32 = arith.constant 0 : i32
    %c0_i32_0 = arith.constant 0 : i32
    %c0_i32_1 = arith.constant 0 : i32
    return %c0_i32, %c0_i32_0 : i32, i32
  }
  func.func @transform_6(%arg0: i32) -> (i32, i32) {
    %c0_i32 = arith.constant 0 : i32
    %c0_i32_0 = arith.constant 0 : i32
    return %arg0, %c0_i32 : i32, i32
  }
}

</mosaic_0001>

<bundles_post_ra>
// kernel: tpu_custom_call.1
= control target key start
LH: loop header
LB: loop body
LE: loop exit
PB: predicated region body
PF: predicated region fallthrough
CT: control target
= control target key end

     0   :  { %11 = vsyncpa [#allocation3], 0  ;;  %s962_s0 = inlined_call_operand.hbm [shape: s32[8,8], index: 0, kind: input, shape index: {}]   ;;  %s963_s1 = inlined_call_operand.hbm [shape: f32[128,128], index: 1, kind: input, shape index: {}]   ;;  %s964_s2 = inlined_call_operand.hbm [shape: f32[128,128], index: 2, kind: input, shape index: {}]   ;;  %s965_s3 = inlined_call_operand.vmem [shape: f32[1,128], index: 3, kind: input, shape index: {}]   ;;  %s966_s4 = inlined_call_operand.hbm [shape: f32[128,128], index: 4, kind: input, shape index: {}]   ;;  %s967_s5 = inlined_call_operand.vmem [shape: f32[1,128], index: 5, kind: input, shape index: {}]   ;;  %s968_s6 = inlined_call_operand.hbm [shape: f32[8,128], index: 6, kind: output, shape index: {}]  }
   0x1   :  { %12 = vsyncpa [#allocation6], 0 }
   0x2   :  { %13 = vsyncpa [#allocation9], 0 }
   0x3   :  { %14 = vsyncpa [#allocation4], 0  ;;  %s795_s21 = smov [#allocation5]   ;;  %s677_s25 = scalar_lea.hbm %s963_s1, 2048 }
   0x4   :  { %s30_s22 = sshll.u32 %s795_s21, 4  ;;  %p678_p0 = scmp.ne.s32.totalorder %s963_s1, %s677_s25  ;;  %s31_s22 = int_to_ptr.vmem [resolvable:$true] %s30_s22 }
   0x5   :  { %p681_p1 = scmp.lt.u32.totalorder %s677_s25, %s963_s1 }
   0x7   :  { %p683_p2 = pnand %p681_p1, %p678_p0 }
   0x9   :  { %686 = shalt.err (!%p683_p2)
}
   0xa   :  { %s687_s30 = scalar_lea.vmem %s31_s22, 2048  ;;  %p692_p4 = scmp.lt.s32.totalorder %s31_s22, %s31_s22 }
   0xb   :  { %p688_p3 = scmp.ne.s32.totalorder %s31_s22, %s687_s30  ;;  %p693_p5 = scmp.lt.s32.totalorder %s687_s30, %s687_s30 }
   0xd   :  { %p694_p6 = por %p693_p5, %p692_p4 }
   0xf   :  { %p695_p7 = pnand %p694_p6, %p688_p3 }
  0x11   :  { %698 = shalt.err (!%p695_p7)
}
  0x12   :  { %s796_s7 = smov 128   ;;  %s797_s8 = smov 8  }
  0x13   :  { %36 = dma.hbm_to_vmem [thread:$0]  %s963_s1, 2048, %s31_s22, [#allocation6], %s796_s7, %s796_s7, %s797_s8  }
  0x14   :  { %s798_s11 = smov [#allocation2]   ;;  %s799_s13 = smov [#allocation7]  }
  0x15   :  { %s21_s12 = sshll.u32 %s798_s11, 4  ;;  %s42_s14 = sshll.u32 %s799_s13, 4  ;;  %s22_s12 = int_to_ptr.vmem [resolvable:$true] %s21_s12  ;;  %s43_s14 = int_to_ptr.vmem [resolvable:$true] %s42_s14 }
  0x16   :  { %s699_s17 = scalar_lea.hbm %s962_s0, 128 }
  0x17   :  { %p700_p8 = scmp.ne.s32.totalorder %s962_s0, %s699_s17  ;;  %p703_p9 = scmp.lt.u32.totalorder %s699_s17, %s962_s0 }
  0x19   :  { %p705_p10 = pnand %p703_p9, %p700_p8 }
  0x1b   :  { %708 = shalt.err (!%p705_p10)
}
  0x1c   :  { %s709_s1 = scalar_lea.vmem %s22_s12, 128  ;;  %p714_p12 = scmp.lt.s32.totalorder %s22_s12, %s22_s12 }
  0x1d   :  { %p710_p11 = scmp.ne.s32.totalorder %s22_s12, %s709_s1  ;;  %p715_p13 = scmp.lt.s32.totalorder %s709_s1, %s709_s1 }
  0x1f   :  { %p716_p0 = por %p715_p13, %p714_p12 }
  0x21   :  { %p717_p1 = pnand %p716_p0, %p710_p11 }
  0x23   :  { %720 = shalt.err (!%p717_p1)
}
  0x24   :  { %24 = dma.hbm_to_vmem [thread:$0]  %s962_s0, 128, %s22_s12, [#allocation3]  }
  0x25   :  { %s721_s26 = scalar_lea.hbm %s964_s2, 2048 }
  0x26   :  { %p722_p2 = scmp.ne.s32.totalorder %s964_s2, %s721_s26  ;;  %p725_p3 = scmp.lt.u32.totalorder %s721_s26, %s964_s2 }
  0x28   :  { %p727_p4 = pnand %p725_p3, %p722_p2 }
  0x2a   :  { %730 = shalt.err (!%p727_p4)
}
  0x2b   :  { %s731_s9 = scalar_lea.vmem %s43_s14, 2048  ;;  %p736_p6 = scmp.lt.s32.totalorder %s43_s14, %s43_s14 }
  0x2c   :  { %p732_p5 = scmp.ne.s32.totalorder %s43_s14, %s731_s9  ;;  %p737_p7 = scmp.lt.s32.totalorder %s731_s9, %s731_s9 }
  0x2e   :  { %p738_p8 = por %p737_p7, %p736_p6 }
  0x30   :  { %p739_p9 = pnand %p738_p8, %p732_p5 }
  0x32   :  { %742 = shalt.err (!%p739_p9)
}
  0x33   :  { %48 = dma.hbm_to_vmem [thread:$0]  %s964_s2, 2048, %s43_s14, [#allocation6], %s796_s7, %s796_s7, %s797_s8  }
  0x34   :  { %s800_s11 = smov [#allocation8]   ;;  %s743_s16 = scalar_lea.hbm %s966_s4, 2048 }
  0x35   :  { %s56_s12 = sshll.u32 %s800_s11, 4  ;;  %p744_p10 = scmp.ne.s32.totalorder %s966_s4, %s743_s16  ;;  %s57_s12 = int_to_ptr.vmem [resolvable:$true] %s56_s12 }
  0x36   :  { %p747_p11 = scmp.lt.u32.totalorder %s743_s16, %s966_s4 }
  0x38   :  { %p749_p12 = pnand %p747_p11, %p744_p10 }
  0x3a   :  { %752 = shalt.err (!%p749_p12)
}
  0x3b   :  { %s753_s21 = scalar_lea.vmem %s57_s12, 2048  ;;  %p758_p0 = scmp.lt.s32.totalorder %s57_s12, %s57_s12 }
  0x3c   :  { %p754_p13 = scmp.ne.s32.totalorder %s57_s12, %s753_s21  ;;  %p759_p1 = scmp.lt.s32.totalorder %s753_s21, %s753_s21 }
  0x3e   :  { %p760_p2 = por %p759_p1, %p758_p0 }
  0x40   :  { %p761_p3 = pnand %p760_p2, %p754_p13 }
  0x42   :  { %764 = shalt.err (!%p761_p3)
}
  0x43   :  { %62 = dma.hbm_to_vmem [thread:$0]  %s966_s4, 2048, %s57_s12, [#allocation9], %s796_s7, %s796_s7, %s797_s8  }
  0x44   :  { %787 = dma.done.wait [#allocation3], 128  }
  0x45   :  { %788 = vsyncadd [#allocation3], 4294967168 }
  0x46   :  { %789 = dma.done.wait [#allocation6], 4096  }
  0x47   :  { %790 = vsyncadd [#allocation6], 4294963200 }
  0x48   :  { %791 = dma.done.wait [#allocation9], 2048  }
  0x49   :  { %792 = vsyncadd [#allocation9], 4294965248  ;;  %v801_v0 = vmov 2   ;;  %v802_v1 = vmov 0   ;;  %v803_v2 = vmov 0.0|0.0   ;;  %v77_v3 = vld [vmem:[#allocation2] sm:$0xff]  ;;  %v78_v56 = vlaneseq }
  0x4a   :  { %670 = vset.pattern.permute.xlu1 %v801_v0  ;;  %668 = vset.pattern.permute.xlu0 %v802_v1  ;;  %v128_v4 = vld [vmem:[#allocation5] sm:$0xff]  ;;  %v129_v5 = vld [vmem:[#allocation5 + $0x8] sm:$0xff]  ;;  %v130_v7 = vld [vmem:[#allocation5 + $0x10] sm:$0xff]  ;;  %v804_v10 = vmov 3   ;;  %v805_v11 = vmov 1   ;;  %v806_v17 = vmov 4  }
  0x4b   :  { %578 = vmatprep.subr.bf16.mxu0 %v803_v2  ;;  %602 = vmatprep.subr.bf16.mxu1 %v803_v2  ;;  %v579_v6 = vpack.c.bf16 %v129_v5, %v128_v4  ;;  %v131_v8 = vld [vmem:[#allocation5 + $0x18] sm:$0xff]  ;;  %v132_v12 = vld [vmem:[#allocation5 + $0x20] sm:$0xff]  ;;  %v133_v13 = vld [vmem:[#allocation5 + $0x28] sm:$0xff]  ;;  %v807_v18 = vmov 5   ;;  %v808_v22 = vmov 6   ;;  %v809_v23 = vmov 7  }
  0x4c   :  { %92 = vperm.xlu1 %670, %v77_v3   ;;  %81 = vperm.xlu0 %668, %v77_v3   ;;  %v582_v9 = vpack.c.bf16 %v131_v8, %v130_v7  ;;  %v585_v14 = vpack.c.bf16 %v133_v13, %v132_v12  ;;  %v134_v15 = vld [vmem:[#allocation5 + $0x30] sm:$0xff]  ;;  %v135_v16 = vld [vmem:[#allocation5 + $0x38] sm:$0xff]  ;;  %v136_v20 = vld [vmem:[#allocation5 + $0x40] sm:$0xff]  ;;  %vm810_vm0 = vmmov 0   ;;  %v811_v33 = vmov 0.0   ;;  %s812_s22 = smov [#allocation10]  }
  0x4d   :  { %580 = vmatpush3.bf16.msra.mxu0 %v579_v6  ;;  %v588_v19 = vpack.c.bf16 %v135_v16, %v134_v15  ;;  %v137_v21 = vld [vmem:[#allocation5 + $0x48] sm:$0xff]  ;;  %v138_v25 = vld [vmem:[#allocation5 + $0x50] sm:$0xff]  ;;  %v139_v26 = vld [vmem:[#allocation5 + $0x58] sm:$0xff]  ;;  %505 = vmatprep.mubr.msk.f32.mxu0 %vm810_vm0, %v811_v33  ;;  %v79_v59 = vand.u32 127, %v78_v56  ;;  %s409_s23 = sshll.u32 %s812_s22, 4  ;;  %s410_s23 = int_to_ptr.vmem [resolvable:$true] %s409_s23 }
  0x4e   :  { %581 = vmatprep.subr.bf16.mxu0 %v803_v2  ;;  %v591_v24 = vpack.c.bf16 %v137_v21, %v136_v20  ;;  %v594_v27 = vpack.c.bf16 %v139_v26, %v138_v25  ;;  %v140_v28 = vld [vmem:[#allocation5 + $0x60] sm:$0xff]  ;;  %v141_v29 = vld [vmem:[#allocation5 + $0x68] sm:$0xff]  ;;  %v142_v31 = vld [vmem:[#allocation5 + $0x70] sm:$0xff]  ;;  %540 = vmatprep.mubr.msk.f32.mxu1 %vm810_vm0, %v811_v33  ;;  %s765_s24 = scalar_lea.vmem %s410_s23, 128  ;;  %p770_p5 = scmp.lt.s32.totalorder %s410_s23, %s410_s23 }
  0x4f   :  { %v597_v30 = vpack.c.bf16 %v141_v29, %v140_v28  ;;  %v143_v32 = vld [vmem:[#allocation5 + $0x78] sm:$0xff]  ;;  %v215_v34 = vld [vmem:[#allocation7] sm:$0xff]  ;;  %v216_v35 = vld [vmem:[#allocation7 + $0x8] sm:$0xff]  ;;  %p766_p4 = scmp.ne.s32.totalorder %s410_s23, %s765_s24  ;;  %p771_p6 = scmp.lt.s32.totalorder %s765_s24, %s765_s24 }
  0x50   :  { %671 = vset.pattern.permute.xlu1 %v804_v10  ;;  %669 = vset.pattern.permute.xlu0 %v805_v11  ;;  %v217_v36 = vld [vmem:[#allocation7 + $0x10] sm:$0xff]  ;;  %v600_v37 = vpack.c.bf16 %v143_v32, %v142_v31  ;;  %v603_v38 = vpack.c.bf16 %v216_v35, %v215_v34  ;;  %v218_v39 = vld [vmem:[#allocation7 + $0x18] sm:$0xff]  ;;  %v219_v41 = vld [vmem:[#allocation7 + $0x20] sm:$0xff] }
  0x51   :  { %98 = vperm.xlu1 %671, %v77_v3   ;;  %86 = vperm.xlu0 %669, %v77_v3   ;;  %v606_v40 = vpack.c.bf16 %v218_v39, %v217_v36  ;;  %v220_v42 = vld [vmem:[#allocation7 + $0x28] sm:$0xff]  ;;  %v221_v44 = vld [vmem:[#allocation7 + $0x30] sm:$0xff]  ;;  %v222_v45 = vld [vmem:[#allocation7 + $0x38] sm:$0xff]  ;;  %p772_p7 = por %p771_p6, %p770_p5 }
  0x52   :  { %583 = vmatpush3.bf16.msra.mxu0 %v582_v9  ;;  %604 = vmatpush3.bf16.msra.mxu1 %v603_v38  ;;  %v609_v43 = vpack.c.bf16 %v220_v42, %v219_v41  ;;  %v612_v46 = vpack.c.bf16 %v222_v45, %v221_v44  ;;  %v223_v47 = vld [vmem:[#allocation7 + $0x40] sm:$0xff]  ;;  %v224_v48 = vld [vmem:[#allocation7 + $0x48] sm:$0xff]  ;;  %v225_v50 = vld [vmem:[#allocation7 + $0x50] sm:$0xff] }
  0x53   :  { %584 = vmatprep.subr.bf16.mxu0 %v803_v2  ;;  %605 = vmatprep.subr.bf16.mxu1 %v803_v2  ;;  %v615_v49 = vpack.c.bf16 %v224_v48, %v223_v47  ;;  %v226_v51 = vld [vmem:[#allocation7 + $0x58] sm:$0xff]  ;;  %v227_v53 = vld [vmem:[#allocation7 + $0x60] sm:$0xff]  ;;  %v228_v54 = vld [vmem:[#allocation7 + $0x68] sm:$0xff]  ;;  %p773_p8 = pnand %p772_p7, %p766_p4 }
  0x54   :  { %v618_v52 = vpack.c.bf16 %v226_v51, %v225_v50  ;;  %v621_v55 = vpack.c.bf16 %v228_v54, %v227_v53  ;;  %v229_v20 = vld [vmem:[#allocation7 + $0x70] sm:$0xff]  ;;  %v230_v21 = vld [vmem:[#allocation7 + $0x78] sm:$0xff]  ;;  %v314_v29 = vld [vmem:[#allocation8 + $0x28] sm:$0xff] }
  0x55   :  { %672 = vset.pattern.permute.xlu1 %v806_v17  ;;  %673 = vset.pattern.permute.xlu0 %v807_v18  ;;  %v311_v25 = vld [vmem:[#allocation8 + $0x10] sm:$0xff]  ;;  %v316_v32 = vld [vmem:[#allocation8 + $0x38] sm:$0xff]  ;;  %v317_v34 = vld [vmem:[#allocation8 + $0x40] sm:$0xff] }
  0x56   :  { %104 = vperm.xlu1 %672, %v77_v3   ;;  %110 = vperm.xlu0 %673, %v77_v3   ;;  %v315_v31 = vld [vmem:[#allocation8 + $0x30] sm:$0xff]  ;;  %v318_v35 = vld [vmem:[#allocation8 + $0x48] sm:$0xff]  ;;  %v320_v38 = vld [vmem:[#allocation8 + $0x58] sm:$0xff] }
  0x57   :  { %586 = vmatpush3.bf16.msra.mxu0 %v585_v14  ;;  %607 = vmatpush3.bf16.msra.mxu1 %v606_v40  ;;  %v639_v36 = vpack.c.bf16 %v318_v35, %v317_v34  ;;  %v321_v40 = vld [vmem:[#allocation8 + $0x60] sm:$0xff]  ;;  %v322_v41 = vld [vmem:[#allocation8 + $0x68] sm:$0xff]  ;;  %v324_v47 = vld [vmem:[#allocation8 + $0x78] sm:$0xff] }
  0x58   :  { %587 = vmatprep.subr.bf16.mxu0 %v803_v2  ;;  %608 = vmatprep.subr.bf16.mxu1 %v803_v2  ;;  %v645_v42 = vpack.c.bf16 %v322_v41, %v321_v40 }
  0x5a   :  { %674 = vset.pattern.permute.xlu1 %v808_v22  ;;  %676 = vset.pattern.permute.xlu0 %v809_v23  ;;  %v624_v22 = vpack.c.bf16 %v230_v21, %v229_v20 }
  0x5b   :  { %116 = vperm.xlu1 %674, %v77_v3   ;;  %589 = vmatpush3.bf16.msra.mxu0 %v588_v19 }
  0x5c   :  { %590 = vmatprep.subr.bf16.mxu0 %v803_v2  ;;  %610 = vmatpush3.bf16.msra.mxu1 %v609_v43 }
  0x5d   :  { %611 = vmatprep.subr.bf16.mxu1 %v803_v2 }
  0x5f   :  { %675 = vset.pattern.permute.xlu1 %v809_v23  ;;  %592 = vmatpush3.bf16.msra.mxu0 %v591_v24  ;;  %v309_v23 = vld [vmem:[#allocation8] sm:$0xff]  ;;  %v310_v24 = vld [vmem:[#allocation8 + $0x8] sm:$0xff] }
  0x60   :  { %122 = vperm.xlu1 %675, %v77_v3   ;;  %593 = vmatprep.subr.bf16.mxu0 %v803_v2  ;;  %v627_v26 = vpack.c.bf16 %v310_v24, %v309_v23 }
  0x61   :  { %613 = vmatpush3.bf16.msra.mxu1 %v612_v46  ;;  %v323_v46 = vld [vmem:[#allocation8 + $0x70] sm:$0xff] }
  0x62   :  { %614 = vmatprep.subr.bf16.mxu1 %v803_v2  ;;  %v648_v48 = vpack.c.bf16 %v324_v47, %v323_v46 }
  0x63   :  { %595 = vmatpush3.bf16.msra.mxu0 %v594_v27  ;;  %v312_v27 = vld [vmem:[#allocation8 + $0x18] sm:$0xff] }
  0x64   :  { %596 = vmatprep.subr.bf16.mxu0 %v803_v2  ;;  %v630_v28 = vpack.c.bf16 %v312_v27, %v311_v25 }
  0x65   :  { %616 = vmatpush3.bf16.msra.mxu1 %v615_v49  ;;  %v420_v49 = vld [vmem:[%s965_s3] ss:$0 sm:$0xff] }
  0x66   :  { %617 = vmatprep.subr.bf16.mxu1 %v803_v2 }
  0x67   :  { %598 = vmatpush3.bf16.msra.mxu0 %v597_v30 }
  0x68   :  { %599 = vmatprep.subr.bf16.mxu0 %v803_v2 }
  0x69   :  { %619 = vmatpush3.bf16.msra.mxu1 %v618_v52 }
  0x6a   :  { %620 = vmatprep.subr.bf16.mxu1 %v803_v2 }
  0x6b   :  { %601 = vmatpush3.bf16.msra.mxu0 %v600_v37  ;;  %v319_v37 = vld [vmem:[#allocation8 + $0x50] sm:$0xff] }
  0x6c   :  { %626 = vmatprep.subr.bf16.mxu0 %v803_v2  ;;  %v642_v39 = vpack.c.bf16 %v320_v38, %v319_v37 }
  0x6d   :  { %622 = vmatpush3.bf16.msra.mxu1 %v621_v55 }
  0x6e   :  { %623 = vmatprep.subr.bf16.mxu1 %v803_v2 }
  0x71   :  { %625 = vmatpush3.bf16.msra.mxu1 %v624_v22 }
  0xcb   :  { %v93_v57 = vpop.permute.xlu1 %92  ;;  %v82_v58 = vpop.permute.xlu0 %81 }
  0xcc   :  { %vm83_vm1 = vcmp.eq.s32.totalorder %v82_v58, %v79_v59  ;;  %vm94_vm2 = vcmp.eq.s32.totalorder %v93_v57, %v79_v59 }
  0xcd   :  { %v84_v62 = vsel %vm83_vm1, 1, %v802_v1  ;;  %v95_v3 = vsel %vm94_vm2, 1, %v802_v1 }
  0xd0   :  { %v99_v60 = vpop.permute.xlu1 %98  ;;  %v87_v61 = vpop.permute.xlu0 %86 }
  0xd1   :  { %vm88_vm3 = vcmp.eq.s32.totalorder %v87_v61, %v79_v59  ;;  %vm100_vm4 = vcmp.eq.s32.totalorder %v99_v60, %v79_v59 }
  0xd2   :  { %v89_v63 = vsel %vm88_vm3, 1, %v802_v1  ;;  %v101_v7 = vsel %vm100_vm4, 1, %v802_v1 }
  0xd3   :  { %v90_v0 = vadd.s32 %v89_v63, %v84_v62 }
  0xd5   :  { %v96_v4 = vadd.s32 %v95_v3, %v90_v0  ;;  %v105_v5 = vpop.permute.xlu1 %104  ;;  %v111_v6 = vpop.permute.xlu0 %110 }
  0xd6   :  { %vm106_vm5 = vcmp.eq.s32.totalorder %v105_v5, %v79_v59  ;;  %vm112_vm6 = vcmp.eq.s32.totalorder %v111_v6, %v79_v59 }
  0xd7   :  { %v102_v8 = vadd.s32 %v101_v7, %v96_v4  ;;  %v107_v9 = vsel %vm106_vm5, 1, %v802_v1  ;;  %v113_v11 = vsel %vm112_vm6, 1, %v802_v1 }
  0xd9   :  { %v108_v10 = vadd.s32 %v107_v9, %v102_v8 }
  0xda   :  { %v117_v12 = vpop.permute.xlu1 %116 }
  0xdb   :  { %vm118_vm7 = vcmp.eq.s32.totalorder %v117_v12, %v79_v59  ;;  %v114_v13 = vadd.s32 %v113_v11, %v108_v10 }
  0xdc   :  { %v119_v14 = vsel %vm118_vm7, 1, %v802_v1 }
  0xdd   :  { %v120_v16 = vadd.s32 %v119_v14, %v114_v13 }
  0xdf   :  { %v123_v15 = vpop.permute.xlu1 %122 }
  0xe0   :  { %vm124_vm8 = vcmp.eq.s32.totalorder %v123_v15, %v79_v59 }
  0xe1   :  { %v125_v17 = vsel %vm124_vm8, 1, %v802_v1  ;;  %v313_v1 = vld [vmem:[#allocation8 + $0x20] sm:$0xff] }
  0xe2   :  { %v126_v18 = vadd.s32 %v125_v17, %v120_v16  ;;  %v633_v30 = vpack.c.bf16 %v314_v29, %v313_v1 }
  0xe4   :  { %v127_v19 = vcvt.s32.f32 %v126_v18 }
  0xe6   :  { %506 = vmatmul.mubr.f32.vlgmr.msra.gmra.mrb[0].mxu0 %v127_v19 }
  0xe7   :  { %575 = vmatprep.mubr.msk.f32.mxu0 %vm810_vm0, %v811_v33  ;;  %628 = vmatpush3.bf16.msra.mxu0 %v627_v26  ;;  %v636_v33 = vpack.c.bf16 %v316_v32, %v315_v31 }
  0xe8   :  { %629 = vmatprep.subr.bf16.mxu0 %v803_v2 }
  0xeb   :  { %631 = vmatpush3.bf16.msra.mxu0 %v630_v28 }
  0xec   :  { %632 = vmatprep.subr.bf16.mxu0 %v803_v2 }
  0xef   :  { %634 = vmatpush3.bf16.msra.mxu0 %v633_v30 }
  0xf0   :  { %635 = vmatprep.subr.bf16.mxu0 %v803_v2 }
  0xf3   :  { %637 = vmatpush3.bf16.msra.mxu0 %v636_v33 }
  0xf4   :  { %638 = vmatprep.subr.bf16.mxu0 %v803_v2 }
  0xf7   :  { %640 = vmatpush3.bf16.msra.mxu0 %v639_v36 }
  0xf8   :  { %641 = vmatprep.subr.bf16.mxu0 %v803_v2 }
  0xfb   :  { %643 = vmatpush3.bf16.msra.mxu0 %v642_v39 }
  0xfc   :  { %644 = vmatprep.subr.bf16.mxu0 %v803_v2 }
  0xff   :  { %646 = vmatpush3.bf16.msra.mxu0 %v645_v42 }
 0x100   :  { %647 = vmatprep.subr.bf16.mxu0 %v803_v2  ;;  %v421_v2 = vld [vmem:[%s967_s5] ss:$0 sm:$0xff] }
 0x103   :  { %649 = vmatpush3.bf16.msra.mxu0 %v648_v48 }
 0x1b9   :  { %v210_v43 = vpop.f32.mrb[0].mxu0 }
 0x1ba   :  { %v214_v44 = vmul.f32 0.125, %v210_v43  ;;  %v507_v45 = vpop.f32.mrb[1].mxu0 }
 0x1bc   :  { %541 = vmatmul.mubr.f32.vlgmr.msra.gmra.mrb[0].mxu1 %v214_v44 }
 0x28f   :  { %v304_v50 = vpop.f32.mrb[0].mxu1 }
 0x290   :  { %v305_v51 = vadd.f32 %v420_v49, %v304_v50  ;;  %v542_v52 = vpop.f32.mrb[1].mxu1 }
 0x292   :  { %v308_v53 = vmax.f32 %v305_v51, 0.0 }
 0x294   :  { %576 = vmatmul.mubr.f32.vlgmr.msra.gmra.mrb[2].mxu0 %v308_v53 }
 0x367   :  { %v398_v54 = vpop.f32.mrb[2].mxu0 }
 0x368   :  { %v399_v55 = vadd.f32 %v421_v2, %v398_v54  ;;  %v577_v56 = vpop.f32.mrb[3].mxu0 }
 0x36a   :  { %402 = vst [vmem:[#allocation10] sm:$0xff] %v399_v55 }
 0x36b   :  { %776 = shalt.err (!%p773_p8)
}
 0x36c   :  { %s777_s26 = scalar_lea.hbm %s968_s6, 128 }
 0x36d   :  { %p778_p9 = scmp.ne.s32.totalorder %s968_s6, %s777_s26  ;;  %p781_p10 = scmp.lt.u32.totalorder %s777_s26, %s968_s6 }
 0x36f   :  { %p783_p11 = pnand %p781_p10, %p778_p9 }
 0x371   :  { %786 = shalt.err (!%p783_p11)
}
 0x372   :  { %412 = dma.vmem_to_hbm [thread:$0]  %s410_s23, 128, %s968_s6, [#allocation4]  }
 0x373   :  { %793 = dma.done.wait [#allocation4], 128  }
 0x374   :  { %794 = vsyncadd [#allocation4], 4294967168 }
 0x375   :  { %416 = vsyncpa [#allocation3], 1 }
 0x376   :  { %417 = vsyncpa [#allocation6], 1 }
 0x377   :  { %418 = vsyncpa [#allocation9], 1 }
 0x378   :  { %419 = vsyncpa [#allocation4], 1 }

// kernel: tpu_custom_call.1
= control target key start
LH: loop header
LB: loop body
LE: loop exit
PB: predicated region body
PF: predicated region fallthrough
CT: control target
= control target key end

     0   :  { %11 = vsyncpa [#allocation3], 0  ;;  %s962_s0 = inlined_call_operand.hbm [shape: s32[8,8], index: 0, kind: input, shape index: {}]   ;;  %s963_s1 = inlined_call_operand.hbm [shape: f32[128,128], index: 1, kind: input, shape index: {}]   ;;  %s964_s2 = inlined_call_operand.hbm [shape: f32[128,128], index: 2, kind: input, shape index: {}]   ;;  %s965_s3 = inlined_call_operand.vmem [shape: f32[1,128], index: 3, kind: input, shape index: {}]   ;;  %s966_s4 = inlined_call_operand.hbm [shape: f32[128,128], index: 4, kind: input, shape index: {}]   ;;  %s967_s5 = inlined_call_operand.vmem [shape: f32[1,128], index: 5, kind: input, shape index: {}]   ;;  %s968_s6 = inlined_call_operand.hbm [shape: f32[8,128], index: 6, kind: output, shape index: {}]  }
   0x1   :  { %12 = vsyncpa [#allocation6], 0 }
   0x2   :  { %13 = vsyncpa [#allocation9], 0 }
   0x3   :  { %14 = vsyncpa [#allocation4], 0  ;;  %s795_s21 = smov [#allocation5]   ;;  %s677_s25 = scalar_lea.hbm %s963_s1, 2048 }
   0x4   :  { %s30_s22 = sshll.u32 %s795_s21, 4  ;;  %p678_p0 = scmp.ne.s32.totalorder %s963_s1, %s677_s25  ;;  %s31_s22 = int_to_ptr.vmem [resolvable:$true] %s30_s22 }
   0x5   :  { %p681_p1 = scmp.lt.u32.totalorder %s677_s25, %s963_s1 }
   0x7   :  { %p683_p2 = pnand %p681_p1, %p678_p0 }
   0x9   :  { %686 = shalt.err (!%p683_p2)
}
   0xa   :  { %s687_s30 = scalar_lea.vmem %s31_s22, 2048  ;;  %p692_p4 = scmp.lt.s32.totalorder %s31_s22, %s31_s22 }
   0xb   :  { %p688_p3 = scmp.ne.s32.totalorder %s31_s22, %s687_s30  ;;  %p693_p5 = scmp.lt.s32.totalorder %s687_s30, %s687_s30 }
   0xd   :  { %p694_p6 = por %p693_p5, %p692_p4 }
   0xf   :  { %p695_p7 = pnand %p694_p6, %p688_p3 }
  0x11   :  { %698 = shalt.err (!%p695_p7)
}
  0x12   :  { %s796_s7 = smov 128   ;;  %s797_s8 = smov 8  }
  0x13   :  { %36 = dma.hbm_to_vmem [thread:$0]  %s963_s1, 2048, %s31_s22, [#allocation6], %s796_s7, %s796_s7, %s797_s8  }
  0x14   :  { %s798_s11 = smov [#allocation2]   ;;  %s799_s13 = smov [#allocation7]  }
  0x15   :  { %s21_s12 = sshll.u32 %s798_s11, 4  ;;  %s42_s14 = sshll.u32 %s799_s13, 4  ;;  %s22_s12 = int_to_ptr.vmem [resolvable:$true] %s21_s12  ;;  %s43_s14 = int_to_ptr.vmem [resolvable:$true] %s42_s14 }
  0x16   :  { %s699_s17 = scalar_lea.hbm %s962_s0, 128 }
  0x17   :  { %p700_p8 = scmp.ne.s32.totalorder %s962_s0, %s699_s17  ;;  %p703_p9 = scmp.lt.u32.totalorder %s699_s17, %s962_s0 }
  0x19   :  { %p705_p10 = pnand %p703_p9, %p700_p8 }
  0x1b   :  { %708 = shalt.err (!%p705_p10)
}
  0x1c   :  { %s709_s1 = scalar_lea.vmem %s22_s12, 128  ;;  %p714_p12 = scmp.lt.s32.totalorder %s22_s12, %s22_s12 }
  0x1d   :  { %p710_p11 = scmp.ne.s32.totalorder %s22_s12, %s709_s1  ;;  %p715_p13 = scmp.lt.s32.totalorder %s709_s1, %s709_s1 }
  0x1f   :  { %p716_p0 = por %p715_p13, %p714_p12 }
  0x21   :  { %p717_p1 = pnand %p716_p0, %p710_p11 }
  0x23   :  { %720 = shalt.err (!%p717_p1)
}
  0x24   :  { %24 = dma.hbm_to_vmem [thread:$0]  %s962_s0, 128, %s22_s12, [#allocation3]  }
  0x25   :  { %s721_s26 = scalar_lea.hbm %s964_s2, 2048 }
  0x26   :  { %p722_p2 = scmp.ne.s32.totalorder %s964_s2, %s721_s26  ;;  %p725_p3 = scmp.lt.u32.totalorder %s721_s26, %s964_s2 }
  0x28   :  { %p727_p4 = pnand %p725_p3, %p722_p2 }
  0x2a   :  { %730 = shalt.err (!%p727_p4)
}
  0x2b   :  { %s731_s9 = scalar_lea.vmem %s43_s14, 2048  ;;  %p736_p6 = scmp.lt.s32.totalorder %s43_s14, %s43_s14 }
  0x2c   :  { %p732_p5 = scmp.ne.s32.totalorder %s43_s14, %s731_s9  ;;  %p737_p7 = scmp.lt.s32.totalorder %s731_s9, %s731_s9 }
  0x2e   :  { %p738_p8 = por %p737_p7, %p736_p6 }
  0x30   :  { %p739_p9 = pnand %p738_p8, %p732_p5 }
  0x32   :  { %742 = shalt.err (!%p739_p9)
}
  0x33   :  { %48 = dma.hbm_to_vmem [thread:$0]  %s964_s2, 2048, %s43_s14, [#allocation6], %s796_s7, %s796_s7, %s797_s8  }
  0x34   :  { %s800_s11 = smov [#allocation8]   ;;  %s743_s16 = scalar_lea.hbm %s966_s4, 2048 }
  0x35   :  { %s56_s12 = sshll.u32 %s800_s11, 4  ;;  %p744_p10 = scmp.ne.s32.totalorder %s966_s4, %s743_s16  ;;  %s57_s12 = int_to_ptr.vmem [resolvable:$true] %s56_s12 }
  0x36   :  { %p747_p11 = scmp.lt.u32.totalorder %s743_s16, %s966_s4 }
  0x38   :  { %p749_p12 = pnand %p747_p11, %p744_p10 }
  0x3a   :  { %752 = shalt.err (!%p749_p12)
}
  0x3b   :  { %s753_s21 = scalar_lea.vmem %s57_s12, 2048  ;;  %p758_p0 = scmp.lt.s32.totalorder %s57_s12, %s57_s12 }
  0x3c   :  { %p754_p13 = scmp.ne.s32.totalorder %s57_s12, %s753_s21  ;;  %p759_p1 = scmp.lt.s32.totalorder %s753_s21, %s753_s21 }
  0x3e   :  { %p760_p2 = por %p759_p1, %p758_p0 }
  0x40   :  { %p761_p3 = pnand %p760_p2, %p754_p13 }
  0x42   :  { %764 = shalt.err (!%p761_p3)
}
  0x43   :  { %62 = dma.hbm_to_vmem [thread:$0]  %s966_s4, 2048, %s57_s12, [#allocation9], %s796_s7, %s796_s7, %s797_s8  }
  0x44   :  { %787 = dma.done.wait [#allocation3], 128  }
  0x45   :  { %788 = vsyncadd [#allocation3], 4294967168 }
  0x46   :  { %789 = dma.done.wait [#allocation6], 4096  }
  0x47   :  { %790 = vsyncadd [#allocation6], 4294963200 }
  0x48   :  { %791 = dma.done.wait [#allocation9], 2048  }
  0x49   :  { %792 = vsyncadd [#allocation9], 4294965248  ;;  %v801_v0 = vmov 2   ;;  %v802_v1 = vmov 0   ;;  %v803_v2 = vmov 0.0|0.0   ;;  %v77_v3 = vld [vmem:[#allocation2] sm:$0xff]  ;;  %v78_v56 = vlaneseq }
  0x4a   :  { %670 = vset.pattern.permute.xlu1 %v801_v0  ;;  %668 = vset.pattern.permute.xlu0 %v802_v1  ;;  %v128_v4 = vld [vmem:[#allocation5] sm:$0xff]  ;;  %v129_v5 = vld [vmem:[#allocation5 + $0x8] sm:$0xff]  ;;  %v130_v7 = vld [vmem:[#allocation5 + $0x10] sm:$0xff]  ;;  %v804_v10 = vmov 3   ;;  %v805_v11 = vmov 1   ;;  %v806_v17 = vmov 4  }
  0x4b   :  { %578 = vmatprep.subr.bf16.mxu0 %v803_v2  ;;  %602 = vmatprep.subr.bf16.mxu1 %v803_v2  ;;  %v579_v6 = vpack.c.bf16 %v129_v5, %v128_v4  ;;  %v131_v8 = vld [vmem:[#allocation5 + $0x18] sm:$0xff]  ;;  %v132_v12 = vld [vmem:[#allocation5 + $0x20] sm:$0xff]  ;;  %v133_v13 = vld [vmem:[#allocation5 + $0x28] sm:$0xff]  ;;  %v807_v18 = vmov 5   ;;  %v808_v22 = vmov 6   ;;  %v809_v23 = vmov 7  }
  0x4c   :  { %92 = vperm.xlu1 %670, %v77_v3   ;;  %81 = vperm.xlu0 %668, %v77_v3   ;;  %v582_v9 = vpack.c.bf16 %v131_v8, %v130_v7  ;;  %v585_v14 = vpack.c.bf16 %v133_v13, %v132_v12  ;;  %v134_v15 = vld [vmem:[#allocation5 + $0x30] sm:$0xff]  ;;  %v135_v16 = vld [vmem:[#allocation5 + $0x38] sm:$0xff]  ;;  %v136_v20 = vld [vmem:[#allocation5 + $0x40] sm:$0xff]  ;;  %vm810_vm0 = vmmov 0   ;;  %v811_v33 = vmov 0.0   ;;  %s812_s22 = smov [#allocation10]  }
  0x4d   :  { %580 = vmatpush3.bf16.msra.mxu0 %v579_v6  ;;  %v588_v19 = vpack.c.bf16 %v135_v16, %v134_v15  ;;  %v137_v21 = vld [vmem:[#allocation5 + $0x48] sm:$0xff]  ;;  %v138_v25 = vld [vmem:[#allocation5 + $0x50] sm:$0xff]  ;;  %v139_v26 = vld [vmem:[#allocation5 + $0x58] sm:$0xff]  ;;  %505 = vmatprep.mubr.msk.f32.mxu0 %vm810_vm0, %v811_v33  ;;  %v79_v59 = vand.u32 127, %v78_v56  ;;  %s409_s23 = sshll.u32 %s812_s22, 4  ;;  %s410_s23 = int_to_ptr.vmem [resolvable:$true] %s409_s23 }
  0x4e   :  { %581 = vmatprep.subr.bf16.mxu0 %v803_v2  ;;  %v591_v24 = vpack.c.bf16 %v137_v21, %v136_v20  ;;  %v594_v27 = vpack.c.bf16 %v139_v26, %v138_v25  ;;  %v140_v28 = vld [vmem:[#allocation5 + $0x60] sm:$0xff]  ;;  %v141_v29 = vld [vmem:[#allocation5 + $0x68] sm:$0xff]  ;;  %v142_v31 = vld [vmem:[#allocation5 + $0x70] sm:$0xff]  ;;  %540 = vmatprep.mubr.msk.f32.mxu1 %vm810_vm0, %v811_v33  ;;  %s765_s24 = scalar_lea.vmem %s410_s23, 128  ;;  %p770_p5 = scmp.lt.s32.totalorder %s410_s23, %s410_s23 }
  0x4f   :  { %v597_v30 = vpack.c.bf16 %v141_v29, %v140_v28  ;;  %v143_v32 = vld [vmem:[#allocation5 + $0x78] sm:$0xff]  ;;  %v215_v34 = vld [vmem:[#allocation7] sm:$0xff]  ;;  %v216_v35 = vld [vmem:[#allocation7 + $0x8] sm:$0xff]  ;;  %p766_p4 = scmp.ne.s32.totalorder %s410_s23, %s765_s24  ;;  %p771_p6 = scmp.lt.s32.totalorder %s765_s24, %s765_s24 }
  0x50   :  { %671 = vset.pattern.permute.xlu1 %v804_v10  ;;  %669 = vset.pattern.permute.xlu0 %v805_v11  ;;  %v217_v36 = vld [vmem:[#allocation7 + $0x10] sm:$0xff]  ;;  %v600_v37 = vpack.c.bf16 %v143_v32, %v142_v31  ;;  %v603_v38 = vpack.c.bf16 %v216_v35, %v215_v34  ;;  %v218_v39 = vld [vmem:[#allocation7 + $0x18] sm:$0xff]  ;;  %v219_v41 = vld [vmem:[#allocation7 + $0x20] sm:$0xff] }
  0x51   :  { %98 = vperm.xlu1 %671, %v77_v3   ;;  %86 = vperm.xlu0 %669, %v77_v3   ;;  %v606_v40 = vpack.c.bf16 %v218_v39, %v217_v36  ;;  %v220_v42 = vld [vmem:[#allocation7 + $0x28] sm:$0xff]  ;;  %v221_v44 = vld [vmem:[#allocation7 + $0x30] sm:$0xff]  ;;  %v222_v45 = vld [vmem:[#allocation7 + $0x38] sm:$0xff]  ;;  %p772_p7 = por %p771_p6, %p770_p5 }
  0x52   :  { %583 = vmatpush3.bf16.msra.mxu0 %v582_v9  ;;  %604 = vmatpush3.bf16.msra.mxu1 %v603_v38  ;;  %v609_v43 = vpack.c.bf16 %v220_v42, %v219_v41  ;;  %v612_v46 = vpack.c.bf16 %v222_v45, %v221_v44  ;;  %v223_v47 = vld [vmem:[#allocation7 + $0x40] sm:$0xff]  ;;  %v224_v48 = vld [vmem:[#allocation7 + $0x48] sm:$0xff]  ;;  %v225_v50 = vld [vmem:[#allocation7 + $0x50] sm:$0xff] }
  0x53   :  { %584 = vmatprep.subr.bf16.mxu0 %v803_v2  ;;  %605 = vmatprep.subr.bf16.mxu1 %v803_v2  ;;  %v615_v49 = vpack.c.bf16 %v224_v48, %v223_v47  ;;  %v226_v51 = vld [vmem:[#allocation7 + $0x58] sm:$0xff]  ;;  %v227_v53 = vld [vmem:[#allocation7 + $0x60] sm:$0xff]  ;;  %v228_v54 = vld [vmem:[#allocation7 + $0x68] sm:$0xff]  ;;  %p773_p8 = pnand %p772_p7, %p766_p4 }
  0x54   :  { %v618_v52 = vpack.c.bf16 %v226_v51, %v225_v50  ;;  %v621_v55 = vpack.c.bf16 %v228_v54, %v227_v53  ;;  %v229_v20 = vld [vmem:[#allocation7 + $0x70] sm:$0xff]  ;;  %v230_v21 = vld [vmem:[#allocation7 + $0x78] sm:$0xff]  ;;  %v314_v29 = vld [vmem:[#allocation8 + $0x28] sm:$0xff] }
  0x55   :  { %672 = vset.pattern.permute.xlu1 %v806_v17  ;;  %673 = vset.pattern.permute.xlu0 %v807_v18  ;;  %v311_v25 = vld [vmem:[#allocation8 + $0x10] sm:$0xff]  ;;  %v316_v32 = vld [vmem:[#allocation8 + $0x38] sm:$0xff]  ;;  %v317_v34 = vld [vmem:[#allocation8 + $0x40] sm:$0xff] }
  0x56   :  { %104 = vperm.xlu1 %672, %v77_v3   ;;  %110 = vperm.xlu0 %673, %v77_v3   ;;  %v315_v31 = vld [vmem:[#allocation8 + $0x30] sm:$0xff]  ;;  %v318_v35 = vld [vmem:[#allocation8 + $0x48] sm:$0xff]  ;;  %v320_v38 = vld [vmem:[#allocation8 + $0x58] sm:$0xff] }
  0x57   :  { %586 = vmatpush3.bf16.msra.mxu0 %v585_v14  ;;  %607 = vmatpush3.bf16.msra.mxu1 %v606_v40  ;;  %v639_v36 = vpack.c.bf16 %v318_v35, %v317_v34  ;;  %v321_v40 = vld [vmem:[#allocation8 + $0x60] sm:$0xff]  ;;  %v322_v41 = vld [vmem:[#allocation8 + $0x68] sm:$0xff]  ;;  %v324_v47 = vld [vmem:[#allocation8 + $0x78] sm:$0xff] }
  0x58   :  { %587 = vmatprep.subr.bf16.mxu0 %v803_v2  ;;  %608 = vmatprep.subr.bf16.mxu1 %v803_v2  ;;  %v645_v42 = vpack.c.bf16 %v322_v41, %v321_v40 }
  0x5a   :  { %674 = vset.pattern.permute.xlu1 %v808_v22  ;;  %676 = vset.pattern.permute.xlu0 %v809_v23  ;;  %v624_v22 = vpack.c.bf16 %v230_v21, %v229_v20 }
  0x5b   :  { %116 = vperm.xlu1 %674, %v77_v3   ;;  %589 = vmatpush3.bf16.msra.mxu0 %v588_v19 }
  0x5c   :  { %590 = vmatprep.subr.bf16.mxu0 %v803_v2  ;;  %610 = vmatpush3.bf16.msra.mxu1 %v609_v43 }
  0x5d   :  { %611 = vmatprep.subr.bf16.mxu1 %v803_v2 }
  0x5f   :  { %675 = vset.pattern.permute.xlu1 %v809_v23  ;;  %592 = vmatpush3.bf16.msra.mxu0 %v591_v24  ;;  %v309_v23 = vld [vmem:[#allocation8] sm:$0xff]  ;;  %v310_v24 = vld [vmem:[#allocation8 + $0x8] sm:$0xff] }
  0x60   :  { %122 = vperm.xlu1 %675, %v77_v3   ;;  %593 = vmatprep.subr.bf16.mxu0 %v803_v2  ;;  %v627_v26 = vpack.c.bf16 %v310_v24, %v309_v23 }
  0x61   :  { %613 = vmatpush3.bf16.msra.mxu1 %v612_v46  ;;  %v323_v46 = vld [vmem:[#allocation8 + $0x70] sm:$0xff] }
  0x62   :  { %614 = vmatprep.subr.bf16.mxu1 %v803_v2  ;;  %v648_v48 = vpack.c.bf16 %v324_v47, %v323_v46 }
  0x63   :  { %595 = vmatpush3.bf16.msra.mxu0 %v594_v27  ;;  %v312_v27 = vld [vmem:[#allocation8 + $0x18] sm:$0xff] }
  0x64   :  { %596 = vmatprep.subr.bf16.mxu0 %v803_v2  ;;  %v630_v28 = vpack.c.bf16 %v312_v27, %v311_v25 }
  0x65   :  { %616 = vmatpush3.bf16.msra.mxu1 %v615_v49  ;;  %v420_v49 = vld [vmem:[%s965_s3] ss:$0 sm:$0xff] }
  0x66   :  { %617 = vmatprep.subr.bf16.mxu1 %v803_v2 }
  0x67   :  { %598 = vmatpush3.bf16.msra.mxu0 %v597_v30 }
  0x68   :  { %599 = vmatprep.subr.bf16.mxu0 %v803_v2 }
  0x69   :  { %619 = vmatpush3.bf16.msra.mxu1 %v618_v52 }
  0x6a   :  { %620 = vmatprep.subr.bf16.mxu1 %v803_v2 }
  0x6b   :  { %601 = vmatpush3.bf16.msra.mxu0 %v600_v37  ;;  %v319_v37 = vld [vmem:[#allocation8 + $0x50] sm:$0xff] }
  0x6c   :  { %626 = vmatprep.subr.bf16.mxu0 %v803_v2  ;;  %v642_v39 = vpack.c.bf16 %v320_v38, %v319_v37 }
  0x6d   :  { %622 = vmatpush3.bf16.msra.mxu1 %v621_v55 }
  0x6e   :  { %623 = vmatprep.subr.bf16.mxu1 %v803_v2 }
  0x71   :  { %625 = vmatpush3.bf16.msra.mxu1 %v624_v22 }
  0xcb   :  { %v93_v57 = vpop.permute.xlu1 %92  ;;  %v82_v58 = vpop.permute.xlu0 %81 }
  0xcc   :  { %vm83_vm1 = vcmp.eq.s32.totalorder %v82_v58, %v79_v59  ;;  %vm94_vm2 = vcmp.eq.s32.totalorder %v93_v57, %v79_v59 }
  0xcd   :  { %v84_v62 = vsel %vm83_vm1, 1, %v802_v1  ;;  %v95_v3 = vsel %vm94_vm2, 1, %v802_v1 }
  0xd0   :  { %v99_v60 = vpop.permute.xlu1 %98  ;;  %v87_v61 = vpop.permute.xlu0 %86 }
  0xd1   :  { %vm88_vm3 = vcmp.eq.s32.totalorder %v87_v61, %v79_v59  ;;  %vm100_vm4 = vcmp.eq.s32.totalorder %v99_v60, %v79_v59 }
  0xd2   :  { %v89_v63 = vsel %vm88_vm3, 1, %v802_v1  ;;  %v101_v7 = vsel %vm100_vm4, 1, %v802_v1 }
  0xd3   :  { %v90_v0 = vadd.s32 %v89_v63, %v84_v62 }
  0xd5   :  { %v96_v4 = vadd.s32 %v95_v3, %v90_v0  ;;  %v105_v5 = vpop.permute.xlu1 %104  ;;  %v111_v6 = vpop.permute.xlu0 %110 }
  0xd6   :  { %vm106_vm5 = vcmp.eq.s32.totalorder %v105_v5, %v79_v59  ;;  %vm112_vm6 = vcmp.eq.s32.totalorder %v111_v6, %v79_v59 }
  0xd7   :  { %v102_v8 = vadd.s32 %v101_v7, %v96_v4  ;;  %v107_v9 = vsel %vm106_vm5, 1, %v802_v1  ;;  %v113_v11 = vsel %vm112_vm6, 1, %v802_v1 }
  0xd9   :  { %v108_v10 = vadd.s32 %v107_v9, %v102_v8 }
  0xda   :  { %v117_v12 = vpop.permute.xlu1 %116 }
  0xdb   :  { %vm118_vm7 = vcmp.eq.s32.totalorder %v117_v12, %v79_v59  ;;  %v114_v13 = vadd.s32 %v113_v11, %v108_v10 }
  0xdc   :  { %v119_v14 = vsel %vm118_vm7, 1, %v802_v1 }
  0xdd   :  { %v120_v16 = vadd.s32 %v119_v14, %v114_v13 }
  0xdf   :  { %v123_v15 = vpop.permute.xlu1 %122 }
  0xe0   :  { %vm124_vm8 = vcmp.eq.s32.totalorder %v123_v15, %v79_v59 }
  0xe1   :  { %v125_v17 = vsel %vm124_vm8, 1, %v802_v1  ;;  %v313_v1 = vld [vmem:[#allocation8 + $0x20] sm:$0xff] }
  0xe2   :  { %v126_v18 = vadd.s32 %v125_v17, %v120_v16  ;;  %v633_v30 = vpack.c.bf16 %v314_v29, %v313_v1 }
  0xe4   :  { %v127_v19 = vcvt.s32.f32 %v126_v18 }
  0xe6   :  { %506 = vmatmul.mubr.f32.vlgmr.msra.gmra.mrb[0].mxu0 %v127_v19 }
  0xe7   :  { %575 = vmatprep.mubr.msk.f32.mxu0 %vm810_vm0, %v811_v33  ;;  %628 = vmatpush3.bf16.msra.mxu0 %v627_v26  ;;  %v636_v33 = vpack.c.bf16 %v316_v32, %v315_v31 }
  0xe8   :  { %629 = vmatprep.subr.bf16.mxu0 %v803_v2 }
  0xeb   :  { %631 = vmatpush3.bf16.msra.mxu0 %v630_v28 }
  0xec   :  { %632 = vmatprep.subr.bf16.mxu0 %v803_v2 }
  0xef   :  { %634 = vmatpush3.bf16.msra.mxu0 %v633_v30 }
  0xf0   :  { %635 = vmatprep.subr.bf16.mxu0 %v803_v2 }
  0xf3   :  { %637 = vmatpush3.bf16.msra.mxu0 %v636_v33 }
  0xf4   :  { %638 = vmatprep.subr.bf16.mxu0 %v803_v2 }
  0xf7   :  { %640 = vmatpush3.bf16.msra.mxu0 %v639_v36 }
  0xf8   :  { %641 = vmatprep.subr.bf16.mxu0 %v803_v2 }
  0xfb   :  { %643 = vmatpush3.bf16.msra.mxu0 %v642_v39 }
  0xfc   :  { %644 = vmatprep.subr.bf16.mxu0 %v803_v2 }
  0xff   :  { %646 = vmatpush3.bf16.msra.mxu0 %v645_v42 }
 0x100   :  { %647 = vmatprep.subr.bf16.mxu0 %v803_v2  ;;  %v421_v2 = vld [vmem:[%s967_s5] ss:$0 sm:$0xff] }
 0x103   :  { %649 = vmatpush3.bf16.msra.mxu0 %v648_v48 }
 0x1b9   :  { %v210_v43 = vpop.f32.mrb[0].mxu0 }
 0x1ba   :  { %v214_v44 = vmul.f32 0.125, %v210_v43  ;;  %v507_v45 = vpop.f32.mrb[1].mxu0 }
 0x1bc   :  { %541 = vmatmul.mubr.f32.vlgmr.msra.gmra.mrb[0].mxu1 %v214_v44 }
 0x28f   :  { %v304_v50 = vpop.f32.mrb[0].mxu1 }
 0x290   :  { %v305_v51 = vadd.f32 %v420_v49, %v304_v50  ;;  %v542_v52 = vpop.f32.mrb[1].mxu1 }
 0x292   :  { %v308_v53 = vmax.f32 %v305_v51, 0.0 }
 0x294   :  { %576 = vmatmul.mubr.f32.vlgmr.msra.gmra.mrb[2].mxu0 %v308_v53 }
 0x367   :  { %v398_v54 = vpop.f32.mrb[2].mxu0 }
 0x368   :  { %v399_v55 = vadd.f32 %v421_v2, %v398_v54  ;;  %v577_v56 = vpop.f32.mrb[3].mxu0 }
 0x36a   :  { %402 = vst [vmem:[#allocation10] sm:$0xff] %v399_v55 }
 0x36b   :  { %776 = shalt.err (!%p773_p8)
}
 0x36c   :  { %s777_s26 = scalar_lea.hbm %s968_s6, 128 }
 0x36d   :  { %p778_p9 = scmp.ne.s32.totalorder %s968_s6, %s777_s26  ;;  %p781_p10 = scmp.lt.u32.totalorder %s777_s26, %s968_s6 }
 0x36f   :  { %p783_p11 = pnand %p781_p10, %p778_p9 }
 0x371   :  { %786 = shalt.err (!%p783_p11)
}
 0x372   :  { %412 = dma.vmem_to_hbm [thread:$0]  %s410_s23, 128, %s968_s6, [#allocation4]  }
 0x373   :  { %793 = dma.done.wait [#allocation4], 128  }
 0x374   :  { %794 = vsyncadd [#allocation4], 4294967168 }
 0x375   :  { %416 = vsyncpa [#allocation3], 1 }
 0x376   :  { %417 = vsyncpa [#allocation6], 1 }
 0x377   :  { %418 = vsyncpa [#allocation9], 1 }
 0x378   :  { %419 = vsyncpa [#allocation4], 1 }

</bundles_post_ra>
